<compile_context>
chip_gen: v6e
topology: v6e:2x2x1
jax: 0.10.0
libtpu: 0.0.40
codegen_flags: <defaults>
</compile_context>

<pallas_src>
import jax
import jax.numpy as jnp
from jax.experimental import pallas as pl
from jax.experimental.pallas import tpu as pltpu

D_IN = 2            # input_dim
ENC = 3             # encode_dim
HID = ENC * ENC     # 9
TILE_COLS = 512     # rows (lane-packed columns) per grid step; multiple of 128


def _affine(w_ref, b_ref, a):
    """out = W @ a + b, with W:(out,in), a:(in,T), b:(out,1) — VPU broadcast FMAs."""
    w = w_ref[...]                       # (out, in)   tiny
    b = b_ref[...]                       # (out, 1)
    out_dim, in_dim = w.shape
    acc = jnp.broadcast_to(b, (out_dim, a.shape[1]))
    for k in range(in_dim):              # statically unrolled (in_dim is 2 or 9)
        acc = acc + w[:, k:k + 1] * a[k:k + 1, :]
    return acc


def _softmax_ax0(z):
    """Softmax along the (full, unpadded) sublane/feature axis."""
    m = jnp.max(z, axis=0, keepdims=True)
    e = jnp.exp(z - m)
    s = jnp.sum(e, axis=0, keepdims=True)
    return e * pl.reciprocal(s, approx=True)


def autoencoder_kernel(x_ref,
                       w1e_ref, b1e_ref, w2e_ref, b2e_ref,
                       w1d_ref, b1d_ref, w2d_ref, b2d_ref,
                       dec_ref, dy_ref):
    x = x_ref[...]                                       # (D_IN, TILE_COLS)

    # ---- encoder: Linear(2, 9) -> ReLU -> Linear(9, 2) ----
    h = jnp.maximum(_affine(w1e_ref, b1e_ref, x), 0.0)   # (HID, T)
    z = _affine(w2e_ref, b2e_ref, h)                     # (D_IN, T)

    # ---- d_y = softmax(z) over the feature axis; sharpen(., T=1.0) is identity ----
    dy = _softmax_ax0(z)

    # ---- decoder: Linear(2, 9) -> ReLU -> Linear(9, 2) -> Softmax ----
    hd = jnp.maximum(_affine(w1d_ref, b1d_ref, dy), 0.0)
    zd = _affine(w2d_ref, b2d_ref, hd)
    dec = _softmax_ax0(zd)

    dec_ref[...] = dec
    dy_ref[...] = dy


@jax.jit
def autoencoder_forward(x, params):
    """x: any shape flattening to (-1, D_IN). Returns (dec, d_y), each (N, D_IN)."""
    xf = x.reshape(-1, D_IN).astype(jnp.float32)          # x.view(-1, self.d)
    n = xf.shape[0]
    n_pad = ((n + TILE_COLS - 1) // TILE_COLS) * TILE_COLS

    # Lane-packed layout: features on sublanes, rows on lanes.
    x_p = jnp.zeros((D_IN, n_pad), jnp.float32).at[:, :n].set(xf.T)

    # Weights kept at their natural tiny shapes (out, in); biases as (out, 1).
    w1e = params["w1e"].astype(jnp.float32)               # (HID, D_IN)
    b1e = params["b1e"].astype(jnp.float32)[:, None]      # (HID, 1)
    w2e = params["w2e"].astype(jnp.float32)               # (D_IN, HID)
    b2e = params["b2e"].astype(jnp.float32)[:, None]      # (D_IN, 1)
    w1d = params["w1d"].astype(jnp.float32)
    b1d = params["b1d"].astype(jnp.float32)[:, None]
    w2d = params["w2d"].astype(jnp.float32)
    b2d = params["b2d"].astype(jnp.float32)[:, None]

    grid = (n_pad // TILE_COLS,)
    col_spec = pl.BlockSpec((D_IN, TILE_COLS), lambda i: (0, i))

    def const_spec(a):
        return pl.BlockSpec(a.shape, lambda i: (0, 0))

    param_bytes = 4 * (2 * (HID * D_IN + HID + D_IN * HID + D_IN))
    cost = pl.CostEstimate(
        flops=160 * n_pad,                 # ~144 FMA-flops/row + softmax arithmetic
        transcendentals=10 * n_pad,        # 8 exps + 2 reciprocals per row
        bytes_accessed=3 * D_IN * n_pad * 4 + param_bytes,
    )

    dec_p, dy_p = pl.pallas_call(
        autoencoder_kernel,
        out_shape=(jax.ShapeDtypeStruct((D_IN, n_pad), jnp.float32),
                   jax.ShapeDtypeStruct((D_IN, n_pad), jnp.float32)),
        grid_spec=pltpu.PrefetchScalarGridSpec(
            num_scalar_prefetch=0,
            grid=grid,
            in_specs=[col_spec,
                      const_spec(w1e), const_spec(b1e),
                      const_spec(w2e), const_spec(b2e),
                      const_spec(w1d), const_spec(b1d),
                      const_spec(w2d), const_spec(b2d)],
            out_specs=[col_spec, col_spec],
        ),
        compiler_params=pltpu.CompilerParams(
            dimension_semantics=("parallel",)),
        cost_estimate=cost,
    )(x_p, w1e, b1e, w2e, b2e, w1d, b1d, w2d, b2d)

    # Back to (N, D_IN) row-major, drop padded rows.
    return dec_p[:, :n].T, dy_p[:, :n].T


def init_params(key):
    """Matches the module init: Linear weight ~ N(0, 0.01) (shape (out, in)), bias = 0."""
    k1, k2, k3, k4 = jax.random.split(key, 4)
    std = 0.01
    return {
        "w1e": std * jax.random.normal(k1, (HID, D_IN), jnp.float32),
        "b1e": jnp.zeros((HID,), jnp.float32),
        "w2e": std * jax.random.normal(k2, (D_IN, HID), jnp.float32),
        "b2e": jnp.zeros((D_IN,), jnp.float32),
        "w1d": std * jax.random.normal(k3, (HID, D_IN), jnp.float32),
        "b1d": jnp.zeros((HID,), jnp.float32),
        "w2d": std * jax.random.normal(k4, (D_IN, HID), jnp.float32),
        "b2d": jnp.zeros((D_IN,), jnp.float32),
    }


def reference_forward(x, params):
    """Pure-JAX reference matching the PyTorch forward (incl. sharpen at T=1.0)."""
    xf = x.reshape(-1, D_IN).astype(jnp.float32)
    h = jnp.maximum(xf @ params["w1e"].T + params["b1e"], 0.0)
    z = h @ params["w2e"].T + params["b2e"]
    dy = jax.nn.softmax(z, axis=1)
    dy = dy / jnp.sum(dy, axis=1, keepdims=True)          # sharpen, T=1.0 (identity)
    hd = jnp.maximum(dy @ params["w1d"].T + params["b1d"], 0.0)
    zd = hd @ params["w2d"].T + params["b2d"]
    dec = jax.nn.softmax(zd, axis=1)
    return dec, dy


if __name__ == "__main__":
    key = jax.random.PRNGKey(0)
    kx, kp = jax.random.split(key)
    # x flattens via view(-1, 2); use an (8, 2) input (N=8 rows).
    x = jax.random.normal(kx, (8, D_IN), jnp.float32)
    params = init_params(kp)

    dec, dy = autoencoder_forward(x, params)
    jax.block_until_ready((dec, dy))

    dec_ref, dy_ref = reference_forward(x, params)
    assert dec.shape == (8, D_IN) and dy.shape == (8, D_IN)
    # Tolerance accounts for pl.reciprocal(approx=True) in the softmax denominator.
    assert jnp.allclose(dec, dec_ref, atol=1e-3), "decoder output mismatch"
    assert jnp.allclose(dy, dy_ref, atol=1e-3), "d_y mismatch"

    print("KERNEL_OK")
</pallas_src>

<mosaic_0001>
module attributes {stable_mosaic.version = 11 : i64} {
  func.func @autoencoder_kernel(%arg0: i32, %arg1: memref<2x512xf32, #tpu.memory_space<vmem>>, %arg2: memref<9x2xf32, #tpu.memory_space<vmem>>, %arg3: memref<9x1xf32, #tpu.memory_space<vmem>>, %arg4: memref<2x9xf32, #tpu.memory_space<vmem>>, %arg5: memref<2x1xf32, #tpu.memory_space<vmem>>, %arg6: memref<9x2xf32, #tpu.memory_space<vmem>>, %arg7: memref<9x1xf32, #tpu.memory_space<vmem>>, %arg8: memref<2x9xf32, #tpu.memory_space<vmem>>, %arg9: memref<2x1xf32, #tpu.memory_space<vmem>>, %arg10: memref<2x512xf32, #tpu.memory_space<vmem>>, %arg11: memref<2x512xf32, #tpu.memory_space<vmem>>) attributes {dimension_semantics = [#tpu.dimension_semantics<parallel>], iteration_bounds = array<i64: 1>, scalar_prefetch = 0 : i64, scratch_operands = 0 : i64, tpu.core_type = #tpu.core_type<tc>, window_params = [{transform_indices = @transform_0, window_bounds = array<i64: 2, 512>}, {pipeline_mode = #tpu.pipeline_mode<synchronous>, transform_indices = @transform_1, window_bounds = array<i64: 9, 2>}, {pipeline_mode = #tpu.pipeline_mode<synchronous>, transform_indices = @transform_2, window_bounds = array<i64: 9, 1>}, {pipeline_mode = #tpu.pipeline_mode<synchronous>, transform_indices = @transform_3, window_bounds = array<i64: 2, 9>}, {pipeline_mode = #tpu.pipeline_mode<synchronous>, transform_indices = @transform_4, window_bounds = array<i64: 2, 1>}, {pipeline_mode = #tpu.pipeline_mode<synchronous>, transform_indices = @transform_5, window_bounds = array<i64: 9, 2>}, {pipeline_mode = #tpu.pipeline_mode<synchronous>, transform_indices = @transform_6, window_bounds = array<i64: 9, 1>}, {pipeline_mode = #tpu.pipeline_mode<synchronous>, transform_indices = @transform_7, window_bounds = array<i64: 2, 9>}, {pipeline_mode = #tpu.pipeline_mode<synchronous>, transform_indices = @transform_8, window_bounds = array<i64: 2, 1>}, {transform_indices = @transform_9, window_bounds = array<i64: 2, 512>}, {transform_indices = @transform_10, window_bounds = array<i64: 2, 512>}]} {
    %c0 = arith.constant 0 : index
    %c0_0 = arith.constant 0 : index
    %0 = vector.load %arg1[%c0, %c0_0] : memref<2x512xf32, #tpu.memory_space<vmem>>, vector<2x512xf32>
    %c0_1 = arith.constant 0 : index
    %c0_2 = arith.constant 0 : index
    %1 = vector.load %arg2[%c0_1, %c0_2] : memref<9x2xf32, #tpu.memory_space<vmem>>, vector<9x2xf32>
    %c0_3 = arith.constant 0 : index
    %c0_4 = arith.constant 0 : index
    %2 = vector.load %arg3[%c0_3, %c0_4] : memref<9x1xf32, #tpu.memory_space<vmem>>, vector<9x1xf32>
    %3 = vector.shape_cast %2 : vector<9x1xf32> to vector<9x1xf32>
    %4 = vector.broadcast %3 : vector<9x1xf32> to vector<9x512xf32>
    %5 = vector.extract_strided_slice %1 {offsets = [0, 0], sizes = [9, 1], strides = [1, 1]} : vector<9x2xf32> to vector<9x1xf32>
    %6 = vector.extract_strided_slice %0 {offsets = [0, 0], sizes = [1, 512], strides = [1, 1]} : vector<2x512xf32> to vector<1x512xf32>
    %7 = vector.broadcast %5 : vector<9x1xf32> to vector<9x512xf32>
    %8 = vector.broadcast %6 : vector<1x512xf32> to vector<9x512xf32>
    %9 = arith.mulf %7, %8 : vector<9x512xf32>
    %10 = arith.addf %4, %9 : vector<9x512xf32>
    %11 = vector.extract_strided_slice %1 {offsets = [0, 1], sizes = [9, 1], strides = [1, 1]} : vector<9x2xf32> to vector<9x1xf32>
    %12 = vector.extract_strided_slice %0 {offsets = [1, 0], sizes = [1, 512], strides = [1, 1]} : vector<2x512xf32> to vector<1x512xf32>
    %13 = vector.broadcast %11 : vector<9x1xf32> to vector<9x512xf32>
    %14 = vector.broadcast %12 : vector<1x512xf32> to vector<9x512xf32>
    %15 = arith.mulf %13, %14 : vector<9x512xf32>
    %16 = arith.addf %10, %15 : vector<9x512xf32>
    %cst = arith.constant 0.000000e+00 : f32
    %17 = vector.broadcast %cst : f32 to vector<9x512xf32>
    %18 = arith.maximumf %16, %17 : vector<9x512xf32>
    %c0_5 = arith.constant 0 : index
    %c0_6 = arith.constant 0 : index
    %19 = vector.load %arg4[%c0_5, %c0_6] : memref<2x9xf32, #tpu.memory_space<vmem>>, vector<2x9xf32>
    %c0_7 = arith.constant 0 : index
    %c0_8 = arith.constant 0 : index
    %20 = vector.load %arg5[%c0_7, %c0_8] : memref<2x1xf32, #tpu.memory_space<vmem>>, vector<2x1xf32>
    %21 = vector.shape_cast %20 : vector<2x1xf32> to vector<2x1xf32>
    %22 = vector.broadcast %21 : vector<2x1xf32> to vector<2x512xf32>
    %23 = vector.extract_strided_slice %19 {offsets = [0, 0], sizes = [2, 1], strides = [1, 1]} : vector<2x9xf32> to vector<2x1xf32>
    %24 = vector.extract_strided_slice %18 {offsets = [0, 0], sizes = [1, 512], strides = [1, 1]} : vector<9x512xf32> to vector<1x512xf32>
    %25 = vector.broadcast %23 : vector<2x1xf32> to vector<2x512xf32>
    %26 = vector.broadcast %24 : vector<1x512xf32> to vector<2x512xf32>
    %27 = arith.mulf %25, %26 : vector<2x512xf32>
    %28 = arith.addf %22, %27 : vector<2x512xf32>
    %29 = vector.extract_strided_slice %19 {offsets = [0, 1], sizes = [2, 1], strides = [1, 1]} : vector<2x9xf32> to vector<2x1xf32>
    %30 = vector.extract_strided_slice %18 {offsets = [1, 0], sizes = [1, 512], strides = [1, 1]} : vector<9x512xf32> to vector<1x512xf32>
    %31 = vector.broadcast %29 : vector<2x1xf32> to vector<2x512xf32>
    %32 = vector.broadcast %30 : vector<1x512xf32> to vector<2x512xf32>
    %33 = arith.mulf %31, %32 : vector<2x512xf32>
    %34 = arith.addf %28, %33 : vector<2x512xf32>
    %35 = vector.extract_strided_slice %19 {offsets = [0, 2], sizes = [2, 1], strides = [1, 1]} : vector<2x9xf32> to vector<2x1xf32>
    %36 = vector.extract_strided_slice %18 {offsets = [2, 0], sizes = [1, 512], strides = [1, 1]} : vector<9x512xf32> to vector<1x512xf32>
    %37 = vector.broadcast %35 : vector<2x1xf32> to vector<2x512xf32>
    %38 = vector.broadcast %36 : vector<1x512xf32> to vector<2x512xf32>
    %39 = arith.mulf %37, %38 : vector<2x512xf32>
    %40 = arith.addf %34, %39 : vector<2x512xf32>
    %41 = vector.extract_strided_slice %19 {offsets = [0, 3], sizes = [2, 1], strides = [1, 1]} : vector<2x9xf32> to vector<2x1xf32>
    %42 = vector.extract_strided_slice %18 {offsets = [3, 0], sizes = [1, 512], strides = [1, 1]} : vector<9x512xf32> to vector<1x512xf32>
    %43 = vector.broadcast %41 : vector<2x1xf32> to vector<2x512xf32>
    %44 = vector.broadcast %42 : vector<1x512xf32> to vector<2x512xf32>
    %45 = arith.mulf %43, %44 : vector<2x512xf32>
    %46 = arith.addf %40, %45 : vector<2x512xf32>
    %47 = vector.extract_strided_slice %19 {offsets = [0, 4], sizes = [2, 1], strides = [1, 1]} : vector<2x9xf32> to vector<2x1xf32>
    %48 = vector.extract_strided_slice %18 {offsets = [4, 0], sizes = [1, 512], strides = [1, 1]} : vector<9x512xf32> to vector<1x512xf32>
    %49 = vector.broadcast %47 : vector<2x1xf32> to vector<2x512xf32>
    %50 = vector.broadcast %48 : vector<1x512xf32> to vector<2x512xf32>
    %51 = arith.mulf %49, %50 : vector<2x512xf32>
    %52 = arith.addf %46, %51 : vector<2x512xf32>
    %53 = vector.extract_strided_slice %19 {offsets = [0, 5], sizes = [2, 1], strides = [1, 1]} : vector<2x9xf32> to vector<2x1xf32>
    %54 = vector.extract_strided_slice %18 {offsets = [5, 0], sizes = [1, 512], strides = [1, 1]} : vector<9x512xf32> to vector<1x512xf32>
    %55 = vector.broadcast %53 : vector<2x1xf32> to vector<2x512xf32>
    %56 = vector.broadcast %54 : vector<1x512xf32> to vector<2x512xf32>
    %57 = arith.mulf %55, %56 : vector<2x512xf32>
    %58 = arith.addf %52, %57 : vector<2x512xf32>
    %59 = vector.extract_strided_slice %19 {offsets = [0, 6], sizes = [2, 1], strides = [1, 1]} : vector<2x9xf32> to vector<2x1xf32>
    %60 = vector.extract_strided_slice %18 {offsets = [6, 0], sizes = [1, 512], strides = [1, 1]} : vector<9x512xf32> to vector<1x512xf32>
    %61 = vector.broadcast %59 : vector<2x1xf32> to vector<2x512xf32>
    %62 = vector.broadcast %60 : vector<1x512xf32> to vector<2x512xf32>
    %63 = arith.mulf %61, %62 : vector<2x512xf32>
    %64 = arith.addf %58, %63 : vector<2x512xf32>
    %65 = vector.extract_strided_slice %19 {offsets = [0, 7], sizes = [2, 1], strides = [1, 1]} : vector<2x9xf32> to vector<2x1xf32>
    %66 = vector.extract_strided_slice %18 {offsets = [7, 0], sizes = [1, 512], strides = [1, 1]} : vector<9x512xf32> to vector<1x512xf32>
    %67 = vector.broadcast %65 : vector<2x1xf32> to vector<2x512xf32>
    %68 = vector.broadcast %66 : vector<1x512xf32> to vector<2x512xf32>
    %69 = arith.mulf %67, %68 : vector<2x512xf32>
    %70 = arith.addf %64, %69 : vector<2x512xf32>
    %71 = vector.extract_strided_slice %19 {offsets = [0, 8], sizes = [2, 1], strides = [1, 1]} : vector<2x9xf32> to vector<2x1xf32>
    %72 = vector.extract_strided_slice %18 {offsets = [8, 0], sizes = [1, 512], strides = [1, 1]} : vector<9x512xf32> to vector<1x512xf32>
    %73 = vector.broadcast %71 : vector<2x1xf32> to vector<2x512xf32>
    %74 = vector.broadcast %72 : vector<1x512xf32> to vector<2x512xf32>
    %75 = arith.mulf %73, %74 : vector<2x512xf32>
    %76 = arith.addf %70, %75 : vector<2x512xf32>
    %cst_9 = arith.constant dense<0xFF800000> : vector<512xf32>
    %77 = vector.multi_reduction <maximumf>, %76, %cst_9 [0] : vector<2x512xf32> to vector<512xf32>
    %78 = vector.shape_cast %77 : vector<512xf32> to vector<1x512xf32>
    %79 = vector.broadcast %78 : vector<1x512xf32> to vector<2x512xf32>
    %80 = arith.subf %76, %79 : vector<2x512xf32>
    %81 = math.exp %80 : vector<2x512xf32>
    %cst_10 = arith.constant dense<0.000000e+00> : vector<512xf32>
    %82 = vector.multi_reduction <add>, %81, %cst_10 [0] : vector<2x512xf32> to vector<512xf32>
    %83 = vector.shape_cast %82 : vector<512xf32> to vector<1x512xf32>
    %84 = tpu.reciprocal %83 {approx = true} : vector<1x512xf32> -> vector<1x512xf32>
    %85 = vector.broadcast %84 : vector<1x512xf32> to vector<2x512xf32>
    %86 = arith.mulf %81, %85 : vector<2x512xf32>
    %c0_11 = arith.constant 0 : index
    %c0_12 = arith.constant 0 : index
    %87 = vector.load %arg6[%c0_11, %c0_12] : memref<9x2xf32, #tpu.memory_space<vmem>>, vector<9x2xf32>
    %c0_13 = arith.constant 0 : index
    %c0_14 = arith.constant 0 : index
    %88 = vector.load %arg7[%c0_13, %c0_14] : memref<9x1xf32, #tpu.memory_space<vmem>>, vector<9x1xf32>
    %89 = vector.shape_cast %88 : vector<9x1xf32> to vector<9x1xf32>
    %90 = vector.broadcast %89 : vector<9x1xf32> to vector<9x512xf32>
    %91 = vector.extract_strided_slice %87 {offsets = [0, 0], sizes = [9, 1], strides = [1, 1]} : vector<9x2xf32> to vector<9x1xf32>
    %92 = vector.extract_strided_slice %86 {offsets = [0, 0], sizes = [1, 512], strides = [1, 1]} : vector<2x512xf32> to vector<1x512xf32>
    %93 = vector.broadcast %91 : vector<9x1xf32> to vector<9x512xf32>
    %94 = vector.broadcast %92 : vector<1x512xf32> to vector<9x512xf32>
    %95 = arith.mulf %93, %94 : vector<9x512xf32>
    %96 = arith.addf %90, %95 : vector<9x512xf32>
    %97 = vector.extract_strided_slice %87 {offsets = [0, 1], sizes = [9, 1], strides = [1, 1]} : vector<9x2xf32> to vector<9x1xf32>
    %98 = vector.extract_strided_slice %86 {offsets = [1, 0], sizes = [1, 512], strides = [1, 1]} : vector<2x512xf32> to vector<1x512xf32>
    %99 = vector.broadcast %97 : vector<9x1xf32> to vector<9x512xf32>
    %100 = vector.broadcast %98 : vector<1x512xf32> to vector<9x512xf32>
    %101 = arith.mulf %99, %100 : vector<9x512xf32>
    %102 = arith.addf %96, %101 : vector<9x512xf32>
    %cst_15 = arith.constant 0.000000e+00 : f32
    %103 = vector.broadcast %cst_15 : f32 to vector<9x512xf32>
    %104 = arith.maximumf %102, %103 : vector<9x512xf32>
    %c0_16 = arith.constant 0 : index
    %c0_17 = arith.constant 0 : index
    %105 = vector.load %arg8[%c0_16, %c0_17] : memref<2x9xf32, #tpu.memory_space<vmem>>, vector<2x9xf32>
    %c0_18 = arith.constant 0 : index
    %c0_19 = arith.constant 0 : index
    %106 = vector.load %arg9[%c0_18, %c0_19] : memref<2x1xf32, #tpu.memory_space<vmem>>, vector<2x1xf32>
    %107 = vector.shape_cast %106 : vector<2x1xf32> to vector<2x1xf32>
    %108 = vector.broadcast %107 : vector<2x1xf32> to vector<2x512xf32>
    %109 = vector.extract_strided_slice %105 {offsets = [0, 0], sizes = [2, 1], strides = [1, 1]} : vector<2x9xf32> to vector<2x1xf32>
    %110 = vector.extract_strided_slice %104 {offsets = [0, 0], sizes = [1, 512], strides = [1, 1]} : vector<9x512xf32> to vector<1x512xf32>
    %111 = vector.broadcast %109 : vector<2x1xf32> to vector<2x512xf32>
    %112 = vector.broadcast %110 : vector<1x512xf32> to vector<2x512xf32>
    %113 = arith.mulf %111, %112 : vector<2x512xf32>
    %114 = arith.addf %108, %113 : vector<2x512xf32>
    %115 = vector.extract_strided_slice %105 {offsets = [0, 1], sizes = [2, 1], strides = [1, 1]} : vector<2x9xf32> to vector<2x1xf32>
    %116 = vector.extract_strided_slice %104 {offsets = [1, 0], sizes = [1, 512], strides = [1, 1]} : vector<9x512xf32> to vector<1x512xf32>
    %117 = vector.broadcast %115 : vector<2x1xf32> to vector<2x512xf32>
    %118 = vector.broadcast %116 : vector<1x512xf32> to vector<2x512xf32>
    %119 = arith.mulf %117, %118 : vector<2x512xf32>
    %120 = arith.addf %114, %119 : vector<2x512xf32>
    %121 = vector.extract_strided_slice %105 {offsets = [0, 2], sizes = [2, 1], strides = [1, 1]} : vector<2x9xf32> to vector<2x1xf32>
    %122 = vector.extract_strided_slice %104 {offsets = [2, 0], sizes = [1, 512], strides = [1, 1]} : vector<9x512xf32> to vector<1x512xf32>
    %123 = vector.broadcast %121 : vector<2x1xf32> to vector<2x512xf32>
    %124 = vector.broadcast %122 : vector<1x512xf32> to vector<2x512xf32>
    %125 = arith.mulf %123, %124 : vector<2x512xf32>
    %126 = arith.addf %120, %125 : vector<2x512xf32>
    %127 = vector.extract_strided_slice %105 {offsets = [0, 3], sizes = [2, 1], strides = [1, 1]} : vector<2x9xf32> to vector<2x1xf32>
    %128 = vector.extract_strided_slice %104 {offsets = [3, 0], sizes = [1, 512], strides = [1, 1]} : vector<9x512xf32> to vector<1x512xf32>
    %129 = vector.broadcast %127 : vector<2x1xf32> to vector<2x512xf32>
    %130 = vector.broadcast %128 : vector<1x512xf32> to vector<2x512xf32>
    %131 = arith.mulf %129, %130 : vector<2x512xf32>
    %132 = arith.addf %126, %131 : vector<2x512xf32>
    %133 = vector.extract_strided_slice %105 {offsets = [0, 4], sizes = [2, 1], strides = [1, 1]} : vector<2x9xf32> to vector<2x1xf32>
    %134 = vector.extract_strided_slice %104 {offsets = [4, 0], sizes = [1, 512], strides = [1, 1]} : vector<9x512xf32> to vector<1x512xf32>
    %135 = vector.broadcast %133 : vector<2x1xf32> to vector<2x512xf32>
    %136 = vector.broadcast %134 : vector<1x512xf32> to vector<2x512xf32>
    %137 = arith.mulf %135, %136 : vector<2x512xf32>
    %138 = arith.addf %132, %137 : vector<2x512xf32>
    %139 = vector.extract_strided_slice %105 {offsets = [0, 5], sizes = [2, 1], strides = [1, 1]} : vector<2x9xf32> to vector<2x1xf32>
    %140 = vector.extract_strided_slice %104 {offsets = [5, 0], sizes = [1, 512], strides = [1, 1]} : vector<9x512xf32> to vector<1x512xf32>
    %141 = vector.broadcast %139 : vector<2x1xf32> to vector<2x512xf32>
    %142 = vector.broadcast %140 : vector<1x512xf32> to vector<2x512xf32>
    %143 = arith.mulf %141, %142 : vector<2x512xf32>
    %144 = arith.addf %138, %143 : vector<2x512xf32>
    %145 = vector.extract_strided_slice %105 {offsets = [0, 6], sizes = [2, 1], strides = [1, 1]} : vector<2x9xf32> to vector<2x1xf32>
    %146 = vector.extract_strided_slice %104 {offsets = [6, 0], sizes = [1, 512], strides = [1, 1]} : vector<9x512xf32> to vector<1x512xf32>
    %147 = vector.broadcast %145 : vector<2x1xf32> to vector<2x512xf32>
    %148 = vector.broadcast %146 : vector<1x512xf32> to vector<2x512xf32>
    %149 = arith.mulf %147, %148 : vector<2x512xf32>
    %150 = arith.addf %144, %149 : vector<2x512xf32>
    %151 = vector.extract_strided_slice %105 {offsets = [0, 7], sizes = [2, 1], strides = [1, 1]} : vector<2x9xf32> to vector<2x1xf32>
    %152 = vector.extract_strided_slice %104 {offsets = [7, 0], sizes = [1, 512], strides = [1, 1]} : vector<9x512xf32> to vector<1x512xf32>
    %153 = vector.broadcast %151 : vector<2x1xf32> to vector<2x512xf32>
    %154 = vector.broadcast %152 : vector<1x512xf32> to vector<2x512xf32>
    %155 = arith.mulf %153, %154 : vector<2x512xf32>
    %156 = arith.addf %150, %155 : vector<2x512xf32>
    %157 = vector.extract_strided_slice %105 {offsets = [0, 8], sizes = [2, 1], strides = [1, 1]} : vector<2x9xf32> to vector<2x1xf32>
    %158 = vector.extract_strided_slice %104 {offsets = [8, 0], sizes = [1, 512], strides = [1, 1]} : vector<9x512xf32> to vector<1x512xf32>
    %159 = vector.broadcast %157 : vector<2x1xf32> to vector<2x512xf32>
    %160 = vector.broadcast %158 : vector<1x512xf32> to vector<2x512xf32>
    %161 = arith.mulf %159, %160 : vector<2x512xf32>
    %162 = arith.addf %156, %161 : vector<2x512xf32>
    %cst_20 = arith.constant dense<0xFF800000> : vector<512xf32>
    %163 = vector.multi_reduction <maximumf>, %162, %cst_20 [0] : vector<2x512xf32> to vector<512xf32>
    %164 = vector.shape_cast %163 : vector<512xf32> to vector<1x512xf32>
    %165 = vector.broadcast %164 : vector<1x512xf32> to vector<2x512xf32>
    %166 = arith.subf %162, %165 : vector<2x512xf32>
    %167 = math.exp %166 : vector<2x512xf32>
    %cst_21 = arith.constant dense<0.000000e+00> : vector<512xf32>
    %168 = vector.multi_reduction <add>, %167, %cst_21 [0] : vector<2x512xf32> to vector<512xf32>
    %169 = vector.shape_cast %168 : vector<512xf32> to vector<1x512xf32>
    %170 = tpu.reciprocal %169 {approx = true} : vector<1x512xf32> -> vector<1x512xf32>
    %171 = vector.broadcast %170 : vector<1x512xf32> to vector<2x512xf32>
    %172 = arith.mulf %167, %171 : vector<2x512xf32>
    %c0_22 = arith.constant 0 : index
    %c0_23 = arith.constant 0 : index
    %173 = vector.load %arg10[%c0_22, %c0_23] : memref<2x512xf32, #tpu.memory_space<vmem>>, vector<2x512xf32>
    tpu.vector_store %arg10[%c0_22, %c0_23], %172 {strides = array<i32>} : memref<2x512xf32, #tpu.memory_space<vmem>>, vector<2x512xf32>,
    %c0_24 = arith.constant 0 : index
    %c0_25 = arith.constant 0 : index
    %174 = vector.load %arg11[%c0_24, %c0_25] : memref<2x512xf32, #tpu.memory_space<vmem>>, vector<2x512xf32>
    tpu.vector_store %arg11[%c0_24, %c0_25], %86 {strides = array<i32>} : memref<2x512xf32, #tpu.memory_space<vmem>>, vector<2x512xf32>,
    return
  }
  func.func @transform_0(%arg0: i32) -> (i32, i32) {
    %c0_i32 = arith.constant 0 : i32
    %c0_i32_0 = arith.constant 0 : i32
    return %c0_i32, %arg0 : i32, i32
  }
  func.func @transform_1(%arg0: i32) -> (i32, i32) {
    %c0_i32 = arith.constant 0 : i32
    %c0_i32_0 = arith.constant 0 : i32
    %c0_i32_1 = arith.constant 0 : i32
    return %c0_i32, %c0_i32_0 : i32, i32
  }
  func.func @transform_2(%arg0: i32) -> (i32, i32) {
    %c0_i32 = arith.constant 0 : i32
    %c0_i32_0 = arith.constant 0 : i32
    %c0_i32_1 = arith.constant 0 : i32
    return %c0_i32, %c0_i32_0 : i32, i32
  }
  func.func @transform_3(%arg0: i32) -> (i32, i32) {
    %c0_i32 = arith.constant 0 : i32
    %c0_i32_0 = arith.constant 0 : i32
    %c0_i32_1 = arith.constant 0 : i32
    return %c0_i32, %c0_i32_0 : i32, i32
  }
  func.func @transform_4(%arg0: i32) -> (i32, i32) {
    %c0_i32 = arith.constant 0 : i32
    %c0_i32_0 = arith.constant 0 : i32
    %c0_i32_1 = arith.constant 0 : i32
    return %c0_i32, %c0_i32_0 : i32, i32
  }
  func.func @transform_5(%arg0: i32) -> (i32, i32) {
    %c0_i32 = arith.constant 0 : i32
    %c0_i32_0 = arith.constant 0 : i32
    %c0_i32_1 = arith.constant 0 : i32
    return %c0_i32, %c0_i32_0 : i32, i32
  }
  func.func @transform_6(%arg0: i32) -> (i32, i32) {
    %c0_i32 = arith.constant 0 : i32
    %c0_i32_0 = arith.constant 0 : i32
    %c0_i32_1 = arith.constant 0 : i32
    return %c0_i32, %c0_i32_0 : i32, i32
  }
  func.func @transform_7(%arg0: i32) -> (i32, i32) {
    %c0_i32 = arith.constant 0 : i32
    %c0_i32_0 = arith.constant 0 : i32
    %c0_i32_1 = arith.constant 0 : i32
    return %c0_i32, %c0_i32_0 : i32, i32
  }
  func.func @transform_8(%arg0: i32) -> (i32, i32) {
    %c0_i32 = arith.constant 0 : i32
    %c0_i32_0 = arith.constant 0 : i32
    %c0_i32_1 = arith.constant 0 : i32
    return %c0_i32, %c0_i32_0 : i32, i32
  }
  func.func @transform_9(%arg0: i32) -> (i32, i32) {
    %c0_i32 = arith.constant 0 : i32
    %c0_i32_0 = arith.constant 0 : i32
    return %c0_i32, %arg0 : i32, i32
  }
  func.func @transform_10(%arg0: i32) -> (i32, i32) {
    %c0_i32 = arith.constant 0 : i32
    %c0_i32_0 = arith.constant 0 : i32
    return %c0_i32, %arg0 : i32, i32
  }
}

</mosaic_0001>

<bundles_post_ra>
// kernel: autoencoder_forward.1
= control target key start
LH: loop header
LB: loop body
LE: loop exit
PB: predicated region body
PF: predicated region fallthrough
CT: control target
= control target key end

     0   :  { %v1079_v0 = vmov 2   ;;  %v1080_v1 = vmov 1   ;;  %v1081_v4 = vmov 0   ;;  %v1082_v9 = vmov 3   ;;  %s1490_s3 = inlined_call_operand.vmem [shape: f32[2,9], index: 3, kind: input, shape index: {}]   ;;  %s1491_s1 = inlined_call_operand.vmem [shape: f32[9,2], index: 1, kind: input, shape index: {}]   ;;  %s1492_s2 = inlined_call_operand.vmem [shape: f32[9,1], index: 2, kind: input, shape index: {}]   ;;  %s1493_s4 = inlined_call_operand.vmem [shape: f32[2,1], index: 4, kind: input, shape index: {}]   ;;  %s1494_s5 = inlined_call_operand.vmem [shape: f32[9,2], index: 5, kind: input, shape index: {}]   ;;  %s1495_s7 = inlined_call_operand.vmem [shape: f32[2,9], index: 7, kind: input, shape index: {}]   ;;  %s1496_s6 = inlined_call_operand.vmem [shape: f32[9,1], index: 6, kind: input, shape index: {}]   ;;  %s1497_s8 = inlined_call_operand.vmem [shape: f32[2,1], index: 8, kind: input, shape index: {}]   ;;  %s1498_s0 = inlined_call_operand.vmem [shape: f32[2,512], index: 0, kind: input, shape index: {}]   ;;  %s1499_s10 = inlined_call_operand.vmem [shape: f32[2,512], index: 10, kind: output, shape index: {1}]   ;;  %s1500_s9 = inlined_call_operand.vmem [shape: f32[2,512], index: 9, kind: output, shape index: {0}]  }
   0x1   :  { %1024 = vset.pattern.permute.xlu0 %v1079_v0  ;;  %1021 = vset.pattern.permute.xlu1 %v1080_v1  ;;  %v180_v2 = vld [vmem:[%s1490_s3] sm:$0x3]  ;;  %v36_v7 = vld [vmem:[%s1491_s1 + $0x8] sm:$0x1]  ;;  %v1083_v10 = vmov 5   ;;  %v1084_v11 = vmov 8   ;;  %v60_v21 = vlaneseq }
   0x2   :  { %v35_v3 = vld [vmem:[%s1491_s1] sm:$0xff]  ;;  %245 = vperm.xlu0 %1024, %v180_v2   ;;  %v38_v8 = vld [vmem:[%s1492_s2 + $0x8] sm:$0x1]  ;;  %v1085_v12 = vmov 4   ;;  %v1086_v14 = vmov 6   ;;  %v1087_v16 = vmov 7  }
   0x3   :  { %113 = vperm.xlu1 %1021, %v35_v3   ;;  %v37_v5 = vld [vmem:[%s1492_s2] sm:$0xff]  ;;  %v518_v15 = vld [vmem:[%s1494_s5 + $0x8] sm:$0x1]  ;;  %v1188_v22 = vshrl.u32 %v60_v21, 7  ;;  %vm440_vm0 = vcmask 1041408  }
   0x4   :  { %v181_v6 = vld [vmem:[%s1493_s4] sm:$0x3]  ;;  %v520_v20 = vld [vmem:[%s1496_s6 + $0x8] sm:$0x1] }
   0x5   :  { %v517_v13 = vld [vmem:[%s1494_s5] sm:$0xff]  ;;  %v1191_v23 = vsub.s32 0, %v1188_v22  ;;  %v1194_v24 = vsub.s32 2, %v1188_v22  ;;  %v1197_v25 = vsub.s32 4, %v1188_v22  ;;  %v1200_v26 = vsub.s32 6, %v1188_v22 }
   0x6   :  { %1025 = vset.pattern.permute.xlu0 %v1081_v4  ;;  %v621_v17 = vld [vmem:[%s1495_s7] sm:$0x3]  ;;  %v1203_v27 = vsub.s32 1, %v1188_v22  ;;  %v1206_v28 = vsub.s32 3, %v1188_v22  ;;  %v1209_v29 = vsub.s32 5, %v1188_v22  ;;  %v1212_v30 = vsub.s32 7, %v1188_v22 }
   0x7   :  { %1022 = vset.pattern.permute.xlu1 %v1081_v4  ;;  %51 = vperm.xlu0 %1025, %v35_v3   ;;  %v519_v18 = vld [vmem:[%s1496_s6] sm:$0xff] }
   0x8   :  { %189 = vperm.xlu1 %1022, %v180_v2   ;;  %v622_v19 = vld [vmem:[%s1497_s8] sm:$0x3] }
   0x9   :  { %v34_v31 = vld [vmem:[%s1498_s0] sm:$0xff] }
   0xa   :  { %v63_v32 = vrot.slane %v34_v31, %v1191_v23  ;;  %v67_v33 = vrot.slane %v34_v31, %v1194_v24  ;;  %v71_v34 = vrot.slane %v34_v31, %v1197_v25  ;;  %v75_v35 = vrot.slane %v34_v31, %v1200_v26 }
   0xb   :  { %41 = vperm.xlu0 %1025, %v37_v5   ;;  %v123_v38 = vrot.slane %v34_v31, %v1203_v27  ;;  %v127_v39 = vrot.slane %v34_v31, %v1206_v28  ;;  %v131_v40 = vrot.slane %v34_v31, %v1209_v29  ;;  %v135_v41 = vrot.slane %v34_v31, %v1212_v30 }
   0xc   :  { %1023 = vset.pattern.permute.xlu1 %v1080_v1  ;;  %v83_v42 = vrot.slane %v63_v32, %v1191_v23  ;;  %v87_v43 = vrot.slane %v67_v33, %v1191_v23  ;;  %v91_v44 = vrot.slane %v71_v34, %v1191_v23  ;;  %v95_v45 = vrot.slane %v75_v35, %v1191_v23 }
   0xd   :  { %217 = vperm.xlu1 %1023, %v180_v2   ;;  %v1232_v46 = vrot.slane %v123_v38, %v1203_v27  ;;  %v1235_v47 = vrot.slane %v127_v39, %v1203_v27  ;;  %v1238_v48 = vrot.slane %v131_v40, %v1203_v27  ;;  %v1241_v49 = vrot.slane %v135_v41, %v1203_v27 }
   0xf   :  { %184 = vperm.xlu0 %1025, %v181_v6  }
  0x11   :  { %1026 = vset.pattern.permute.xlu1 %v1081_v4 }
  0x12   :  { %56 = vperm.xlu1 %1026, %v36_v7  }
  0x13   :  { %46 = vperm.xlu0 %1025, %v38_v8  }
  0x16   :  { %1027 = vset.pattern.permute.xlu1 %v1082_v9 }
  0x17   :  { %273 = vperm.xlu1 %1027, %v180_v2   ;;  %1030 = vset.pattern.permute.xlu0 %v1083_v10 }
  0x18   :  { %329 = vperm.xlu0 %1030, %v180_v2  }
  0x1b   :  { %1028 = vset.pattern.permute.xlu1 %v1080_v1 }
  0x1c   :  { %117 = vperm.xlu1 %1028, %v36_v7   ;;  %1033 = vset.pattern.permute.xlu0 %v1084_v11 }
  0x1d   :  { %413 = vperm.xlu0 %1033, %v180_v2  }
  0x20   :  { %1029 = vset.pattern.permute.xlu1 %v1085_v12 }
  0x21   :  { %301 = vperm.xlu1 %1029, %v180_v2   ;;  %1035 = vset.pattern.permute.xlu0 %v1080_v1 }
  0x22   :  { %574 = vperm.xlu0 %1035, %v517_v13  }
  0x25   :  { %1031 = vset.pattern.permute.xlu1 %v1086_v14 }
  0x26   :  { %357 = vperm.xlu1 %1031, %v180_v2   ;;  %1037 = vset.pattern.permute.xlu0 %v1081_v4 }
  0x27   :  { %538 = vperm.xlu0 %1037, %v518_v15  }
  0x2a   :  { %1032 = vset.pattern.permute.xlu1 %v1087_v16 }
  0x2b   :  { %385 = vperm.xlu1 %1032, %v180_v2   ;;  %1038 = vset.pattern.permute.xlu0 %v1080_v1 }
  0x2c   :  { %658 = vperm.xlu0 %1038, %v621_v17  }
  0x2f   :  { %1034 = vset.pattern.permute.xlu1 %v1081_v4 }
  0x30   :  { %533 = vperm.xlu1 %1034, %v517_v13   ;;  %578 = vperm.xlu0 %1038, %v518_v15  }
  0x34   :  { %523 = vperm.xlu1 %1034, %v519_v18   ;;  %1043 = vset.pattern.permute.xlu0 %v1086_v14 }
  0x35   :  { %798 = vperm.xlu0 %1043, %v621_v17  }
  0x38   :  { %630 = vperm.xlu1 %1034, %v621_v17  }
  0x39   :  { %1046 = vset.pattern.permute.xlu0 %v1084_v11 }
  0x3c   :  { %625 = vperm.xlu1 %1034, %v622_v19  }
  0x40   :  { %1036 = vset.pattern.permute.xlu1 %v1079_v0 }
  0x41   :  { %686 = vperm.xlu1 %1036, %v621_v17  }
  0x45   :  { %1039 = vset.pattern.permute.xlu1 %v1082_v9 }
  0x46   :  { %714 = vperm.xlu1 %1039, %v621_v17  }
  0x4a   :  { %1040 = vset.pattern.permute.xlu1 %v1081_v4 }
  0x4b   :  { %528 = vperm.xlu1 %1040, %v520_v20  }
  0x4f   :  { %1041 = vset.pattern.permute.xlu1 %v1085_v12 }
  0x50   :  { %742 = vperm.xlu1 %1041, %v621_v17  }
  0x54   :  { %1042 = vset.pattern.permute.xlu1 %v1083_v10 }
  0x55   :  { %770 = vperm.xlu1 %1042, %v621_v17  }
  0x59   :  { %1044 = vset.pattern.permute.xlu1 %v1087_v16 }
  0x5a   :  { %826 = vperm.xlu1 %1044, %v621_v17  }
  0x5e   :  { %1045 = vset.pattern.permute.xlu1 %v1084_v11 }
  0x5f   :  { %854 = vperm.xlu1 %1045, %v621_v17  }
  0x7d   :  { %v1221_v37 = vpop.permute.xlu0 %245 }
  0x7e   :  { %v114_v36 = vpop.permute.xlu1 %113 }
  0x7f   :  { %v156_v56 = vmul.f32 %v1232_v46, %v114_v36  ;;  %v157_v57 = vmul.f32 %v1235_v47, %v114_v36  ;;  %v158_v58 = vmul.f32 %v1238_v48, %v114_v36  ;;  %v159_v59 = vmul.f32 %v1241_v49, %v114_v36 }
  0x82   :  { %v52_v50 = vpop.permute.xlu0 %51 }
  0x83   :  { %v190_v51 = vpop.permute.xlu1 %189  ;;  %v96_v52 = vmul.f32 %v83_v42, %v52_v50  ;;  %v97_v53 = vmul.f32 %v87_v43, %v52_v50  ;;  %v98_v54 = vmul.f32 %v91_v44, %v52_v50  ;;  %v99_v55 = vmul.f32 %v95_v45, %v52_v50 }
  0x86   :  { %v42_v60 = vpop.permute.xlu0 %41 }
  0x87   :  { %v104_v61 = vadd.f32 %v96_v52, %v42_v60  ;;  %v105_v62 = vadd.f32 %v97_v53, %v42_v60  ;;  %v106_v63 = vadd.f32 %v98_v54, %v42_v60  ;;  %v107_v0 = vadd.f32 %v99_v55, %v42_v60 }
  0x88   :  { %v218_v1 = vpop.permute.xlu1 %217 }
  0x89   :  { %v164_v2 = vadd.f32 %v156_v56, %v104_v61  ;;  %v165_v3 = vadd.f32 %v157_v57, %v105_v62  ;;  %v166_v4 = vadd.f32 %v158_v58, %v106_v63  ;;  %v167_v5 = vadd.f32 %v159_v59, %v107_v0 }
  0x8a   :  { %v185_v15 = vpop.permute.xlu0 %184 }
  0x8b   :  { %v1247_v6 = vmax.f32 %v164_v2, 0.0  ;;  %v1249_v7 = vmax.f32 %v165_v3, 0.0  ;;  %v1251_v8 = vmax.f32 %v166_v4, 0.0  ;;  %v1253_v9 = vmax.f32 %v167_v5, 0.0 }
  0x8d   :  { %v57_v10 = vpop.permute.xlu1 %56  ;;  %v223_v11 = vrot.slane %v1247_v6, %v1203_v27  ;;  %v227_v12 = vrot.slane %v1249_v7, %v1203_v27  ;;  %v231_v13 = vrot.slane %v1251_v8, %v1203_v27  ;;  %v235_v14 = vrot.slane %v1253_v9, %v1203_v27 }
  0x8e   :  { %v195_v16 = vrot.slane %v1247_v6, %v1191_v23  ;;  %v199_v17 = vrot.slane %v1249_v7, %v1191_v23  ;;  %v203_v18 = vrot.slane %v1251_v8, %v1191_v23  ;;  %v207_v19 = vrot.slane %v1253_v9, %v1191_v23  ;;  %v47_v56 = vpop.permute.xlu0 %46 }
  0x8f   :  { %v236_v20 = vmul.f32 %v223_v11, %v218_v1  ;;  %v237_v21 = vmul.f32 %v227_v12, %v218_v1  ;;  %v238_v31 = vmul.f32 %v231_v13, %v218_v1  ;;  %v239_v32 = vmul.f32 %v235_v14, %v218_v1 }
  0x90   :  { %v208_v33 = vmul.f32 %v195_v16, %v190_v51  ;;  %v209_v34 = vmul.f32 %v199_v17, %v190_v51  ;;  %v210_v35 = vmul.f32 %v203_v18, %v190_v51  ;;  %v211_v36 = vmul.f32 %v207_v19, %v190_v51 }
  0x91   :  { %v100_v38 = vmul.f32 %v83_v42, %v57_v10  ;;  %v101_v39 = vmul.f32 %v87_v43, %v57_v10  ;;  %v102_v40 = vmul.f32 %v91_v44, %v57_v10  ;;  %v103_v41 = vmul.f32 %v95_v45, %v57_v10 }
  0x92   :  { %v274_v50 = vpop.permute.xlu1 %273  ;;  %v212_v52 = vadd.f32 %v208_v33, %v185_v15  ;;  %v213_v53 = vadd.f32 %v209_v34, %v185_v15  ;;  %v214_v54 = vadd.f32 %v210_v35, %v185_v15  ;;  %v215_v55 = vadd.f32 %v211_v36, %v185_v15 }
  0x93   :  { %v251_v61 = vrot.slane %v1247_v6, %v1194_v24  ;;  %v255_v51 = vrot.slane %v1249_v7, %v1194_v24  ;;  %v259_v42 = vrot.slane %v1251_v8, %v1194_v24  ;;  %v263_v43 = vrot.slane %v1253_v9, %v1194_v24 }
  0x94   :  { %v240_v57 = vadd.f32 %v236_v20, %v212_v52  ;;  %v241_v58 = vadd.f32 %v237_v21, %v213_v53  ;;  %v242_v59 = vadd.f32 %v238_v31, %v214_v54  ;;  %v243_v60 = vadd.f32 %v239_v32, %v215_v55 }
  0x95   :  { %v108_v44 = vadd.f32 %v100_v38, %v47_v56  ;;  %v109_v45 = vadd.f32 %v101_v39, %v47_v56  ;;  %v110_v62 = vadd.f32 %v102_v40, %v47_v56  ;;  %v111_v63 = vadd.f32 %v103_v41, %v47_v56 }
  0x96   :  { %v264_v1 = vmul.f32 %v251_v61, %v1221_v37  ;;  %v265_v2 = vmul.f32 %v255_v51, %v1221_v37  ;;  %v266_v3 = vmul.f32 %v259_v42, %v1221_v37  ;;  %v267_v4 = vmul.f32 %v263_v43, %v1221_v37 }
  0x97   :  { %v118_v0 = vpop.permute.xlu1 %117  ;;  %v279_v5 = vrot.slane %v1247_v6, %v1206_v28  ;;  %v283_v10 = vrot.slane %v1249_v7, %v1206_v28  ;;  %v287_v11 = vrot.slane %v1251_v8, %v1206_v28  ;;  %v291_v12 = vrot.slane %v1253_v9, %v1206_v28 }
  0x98   :  { %v268_v13 = vadd.f32 %v264_v1, %v240_v57  ;;  %v269_v14 = vadd.f32 %v265_v2, %v241_v58  ;;  %v270_v15 = vadd.f32 %v266_v3, %v242_v59  ;;  %v271_v16 = vadd.f32 %v267_v4, %v243_v60  ;;  %v330_v58 = vpop.permute.xlu0 %329 }
  0x99   :  { %v292_v17 = vmul.f32 %v279_v5, %v274_v50  ;;  %v293_v18 = vmul.f32 %v283_v10, %v274_v50  ;;  %v294_v19 = vmul.f32 %v287_v11, %v274_v50  ;;  %v295_v37 = vmul.f32 %v291_v12, %v274_v50 }
  0x9a   :  { %v335_v20 = vrot.slane %v1247_v6, %v1209_v29  ;;  %v339_v21 = vrot.slane %v1249_v7, %v1209_v29  ;;  %v343_v31 = vrot.slane %v1251_v8, %v1209_v29  ;;  %v347_v32 = vrot.slane %v1253_v9, %v1209_v29 }
  0x9b   :  { %v296_v34 = vadd.f32 %v292_v17, %v268_v13  ;;  %v297_v35 = vadd.f32 %v293_v18, %v269_v14  ;;  %v298_v36 = vadd.f32 %v294_v19, %v270_v15  ;;  %v299_v38 = vadd.f32 %v295_v37, %v271_v16 }
  0x9c   :  { %v302_v33 = vpop.permute.xlu1 %301  ;;  %v160_v39 = vmul.f32 %v1232_v46, %v118_v0  ;;  %v161_v40 = vmul.f32 %v1235_v47, %v118_v0  ;;  %v162_v41 = vmul.f32 %v1238_v48, %v118_v0  ;;  %v163_v50 = vmul.f32 %v1241_v49, %v118_v0 }
  0x9d   :  { %v307_v52 = vrot.slane %v1247_v6, %v1197_v25  ;;  %v311_v53 = vrot.slane %v1249_v7, %v1197_v25  ;;  %v315_v54 = vrot.slane %v1251_v8, %v1197_v25  ;;  %v319_v55 = vrot.slane %v1253_v9, %v1197_v25 }
  0x9e   :  { %v168_v56 = vadd.f32 %v160_v39, %v108_v44  ;;  %v169_v46 = vadd.f32 %v161_v40, %v109_v45  ;;  %v170_v57 = vadd.f32 %v162_v41, %v110_v62  ;;  %v171_v47 = vadd.f32 %v163_v50, %v111_v63 }
  0x9f   :  { %v320_v48 = vmul.f32 %v307_v52, %v302_v33  ;;  %v321_v59 = vmul.f32 %v311_v53, %v302_v33  ;;  %v322_v49 = vmul.f32 %v315_v54, %v302_v33  ;;  %v323_v60 = vmul.f32 %v319_v55, %v302_v33 }
  0xa0   :  { %v176_v51 = vmax.f32 %v168_v56, 0.0  ;;  %v177_v42 = vmax.f32 %v169_v46, 0.0  ;;  %v178_v43 = vmax.f32 %v170_v57, 0.0  ;;  %v179_v0 = vmax.f32 %v171_v47, 0.0 }
  0xa1   :  { %v358_v61 = vpop.permute.xlu1 %357  ;;  %v324_v1 = vadd.f32 %v320_v48, %v296_v34  ;;  %v325_v2 = vadd.f32 %v321_v59, %v297_v35  ;;  %v326_v3 = vadd.f32 %v322_v49, %v298_v36  ;;  %v327_v4 = vadd.f32 %v323_v60, %v299_v38  ;;  %v414_v34 = vpop.permute.xlu0 %413 }
  0xa2   :  { %v348_v5 = vmul.f32 %v335_v20, %v330_v58  ;;  %v349_v10 = vmul.f32 %v339_v21, %v330_v58  ;;  %v350_v44 = vmul.f32 %v343_v31, %v330_v58  ;;  %v351_v45 = vmul.f32 %v347_v32, %v330_v58 }
  0xa3   :  { %v419_v62 = vrot.slane %v176_v51, %v1191_v23  ;;  %v423_v63 = vrot.slane %v177_v42, %v1191_v23  ;;  %v427_v11 = vrot.slane %v178_v43, %v1191_v23  ;;  %v431_v12 = vrot.slane %v179_v0, %v1191_v23 }
  0xa4   :  { %v352_v13 = vadd.f32 %v348_v5, %v324_v1  ;;  %v353_v14 = vadd.f32 %v349_v10, %v325_v2  ;;  %v354_v15 = vadd.f32 %v350_v44, %v326_v3  ;;  %v355_v16 = vadd.f32 %v351_v45, %v327_v4 }
  0xa5   :  { %v363_v17 = vrot.slane %v1247_v6, %v1200_v26  ;;  %v367_v18 = vrot.slane %v1249_v7, %v1200_v26  ;;  %v371_v19 = vrot.slane %v1251_v8, %v1200_v26  ;;  %v375_v37 = vrot.slane %v1253_v9, %v1200_v26 }
  0xa6   :  { %v386_v20 = vpop.permute.xlu1 %385  ;;  %v391_v21 = vrot.slane %v1247_v6, %v1212_v30  ;;  %v395_v31 = vrot.slane %v1249_v7, %v1212_v30  ;;  %v399_v32 = vrot.slane %v1251_v8, %v1212_v30  ;;  %v403_v33 = vrot.slane %v1253_v9, %v1212_v30 }
  0xa7   :  { %v376_v35 = vmul.f32 %v363_v17, %v358_v61  ;;  %v377_v36 = vmul.f32 %v367_v18, %v358_v61  ;;  %v378_v38 = vmul.f32 %v371_v19, %v358_v61  ;;  %v379_v39 = vmul.f32 %v375_v37, %v358_v61 }
  0xa8   :  { %v404_v40 = vmul.f32 %v391_v21, %v386_v20  ;;  %v405_v41 = vmul.f32 %v395_v31, %v386_v20  ;;  %v406_v50 = vmul.f32 %v399_v32, %v386_v20  ;;  %v407_v52 = vmul.f32 %v403_v33, %v386_v20 }
  0xa9   :  { %v380_v53 = vadd.f32 %v376_v35, %v352_v13  ;;  %v381_v6 = vadd.f32 %v377_v36, %v353_v14  ;;  %v382_v54 = vadd.f32 %v378_v38, %v354_v15  ;;  %v383_v55 = vadd.f32 %v379_v39, %v355_v16 }
  0xaa   :  { %v432_v7 = vmul.f32 %v419_v62, %v414_v34  ;;  %v433_v56 = vmul.f32 %v423_v63, %v414_v34  ;;  %v434_v46 = vmul.f32 %v427_v11, %v414_v34  ;;  %v435_v8 = vmul.f32 %v431_v12, %v414_v34 }
  0xab   :  { %v408_v57 = vadd.f32 %v404_v40, %v380_v53  ;;  %v409_v47 = vadd.f32 %v405_v41, %v381_v6  ;;  %v410_v9 = vadd.f32 %v406_v50, %v382_v54  ;;  %v411_v58 = vadd.f32 %v407_v52, %v383_v55 }
  0xad   :  { %v436_v48 = vadd.f32 %v432_v7, %v408_v57  ;;  %v437_v59 = vadd.f32 %v433_v56, %v409_v47  ;;  %v438_v49 = vadd.f32 %v434_v46, %v410_v9  ;;  %v439_v60 = vadd.f32 %v435_v8, %v411_v58  ;;  %v534_v47 = vpop.permute.xlu1 %533 }
  0xaf   :  { %v441_v61 = vsel %vm440_vm0, %v436_v48, -inf  ;;  %v448_v51 = vsel %vm440_vm0, %v437_v59, -inf  ;;  %v455_v42 = vsel %vm440_vm0, %v438_v49, -inf  ;;  %v462_v43 = vsel %vm440_vm0, %v439_v60, -inf }
  0xb0   :  { %v442_v0 = vrot.slane %v441_v61, 4  ;;  %v449_v1 = vrot.slane %v448_v51, 4  ;;  %v456_v2 = vrot.slane %v455_v42, 4  ;;  %v463_v3 = vrot.slane %v462_v43, 4 }
  0xb2   :  { %v443_v4 = vmax.f32 %v441_v61, %v442_v0  ;;  %v450_v5 = vmax.f32 %v448_v51, %v449_v1  ;;  %v457_v10 = vmax.f32 %v455_v42, %v456_v2  ;;  %v464_v44 = vmax.f32 %v462_v43, %v463_v3  ;;  %v524_v2 = vpop.permute.xlu1 %523 }
  0xb4   :  { %v444_v45 = vrot.slane %v443_v4, 2  ;;  %v451_v62 = vrot.slane %v450_v5, 2  ;;  %v458_v63 = vrot.slane %v457_v10, 2  ;;  %v465_v11 = vrot.slane %v464_v44, 2 }
  0xb6   :  { %v445_v12 = vmax.f32 %v443_v4, %v444_v45  ;;  %v452_v13 = vmax.f32 %v450_v5, %v451_v62  ;;  %v459_v14 = vmax.f32 %v457_v10, %v458_v63  ;;  %v466_v15 = vmax.f32 %v464_v44, %v465_v11  ;;  %v1339_v11 = vpop.permute.xlu1 %630 }
  0xb8   :  { %v446_v16 = vrot.slane %v445_v12, 1  ;;  %v453_v17 = vrot.slane %v452_v13, 1  ;;  %v460_v18 = vrot.slane %v459_v14, 1  ;;  %v467_v19 = vrot.slane %v466_v15, 1 }
  0xba   :  { %v447_v37 = vmax.f32 %v445_v12, %v446_v16  ;;  %v454_v20 = vmax.f32 %v452_v13, %v453_v17  ;;  %v461_v21 = vmax.f32 %v459_v14, %v460_v18  ;;  %v468_v31 = vmax.f32 %v466_v15, %v467_v19  ;;  %v1341_v14 = vpop.permute.xlu1 %625 }
  0xbb   :  { %v1088_v12 = vmov 1983009808  }
  0xbc   :  { %v469_v32 = vsub.f32 %v436_v48, %v447_v37  ;;  %v470_v33 = vsub.f32 %v437_v59, %v454_v20  ;;  %v471_v34 = vsub.f32 %v438_v49, %v461_v21  ;;  %v472_v35 = vsub.f32 %v439_v60, %v468_v31  ;;  %v575_v31 = vpop.permute.xlu0 %574 }
  0xbd   :  { %v964_v13 = vunpack.c.l.s4 %v1088_v12 }
  0xbe   :  { %v473_v36 = vmul.f32 1.442695, %v469_v32  ;;  %v475_v38 = vmul.f32 1.442695, %v470_v33  ;;  %v477_v39 = vmul.f32 1.442695, %v471_v34  ;;  %v1343_v16 = vpop.permute.xlu1 %686 }
  0xbf   :  { %v479_v40 = vmul.f32 1.442695, %v472_v35  ;;  %v965_v15 = vunpack.c.0.s8 %v964_v13 }
  0xc0   :  { %1047 = vpow2.f32 %v473_v36 }
  0xc1   :  { %1049 = vpow2.f32 %v475_v38  ;;  %v1346_v20 = vsub.s32 %v965_v15, %v1188_v22 }
  0xc2   :  { %1051 = vpow2.f32 %v477_v39 }
  0xc3   :  { %1053 = vpow2.f32 %v479_v40 }
  0xcd   :  { %v1048_v41 = vpop.eup %1047 }
  0xce   :  { %v1050_v50 = vpop.eup %1049  ;;  %v481_v52 = vsel %vm440_vm0, %v1048_v41, 0.0 }
  0xcf   :  { %v1052_v53 = vpop.eup %1051  ;;  %v482_v6 = vrot.slane %v481_v52, 4  ;;  %v488_v54 = vsel %vm440_vm0, %v1050_v50, 0.0 }
  0xd0   :  { %v1054_v55 = vpop.eup %1053  ;;  %v489_v7 = vrot.slane %v488_v54, 4  ;;  %v495_v56 = vsel %vm440_vm0, %v1052_v53, 0.0 }
  0xd1   :  { %v483_v46 = vadd.f32 %v482_v6, %v481_v52  ;;  %v496_v8 = vrot.slane %v495_v56, 4  ;;  %v502_v57 = vsel %vm440_vm0, %v1054_v55, 0.0 }
  0xd2   :  { %v490_v9 = vadd.f32 %v489_v7, %v488_v54  ;;  %v503_v58 = vrot.slane %v502_v57, 4 }
  0xd3   :  { %v484_v48 = vrot.slane %v483_v46, 2  ;;  %v497_v59 = vadd.f32 %v496_v8, %v495_v56 }
  0xd4   :  { %v491_v49 = vrot.slane %v490_v9, 2  ;;  %v504_v60 = vadd.f32 %v503_v58, %v502_v57 }
  0xd5   :  { %v498_v61 = vrot.slane %v497_v59, 2  ;;  %v485_v51 = vadd.f32 %v484_v48, %v483_v46 }
  0xd6   :  { %v505_v42 = vrot.slane %v504_v60, 2  ;;  %v492_v43 = vadd.f32 %v491_v49, %v490_v9  ;;  %v539_v49 = vpop.permute.xlu0 %538 }
  0xd7   :  { %v486_v0 = vrot.slane %v485_v51, 1  ;;  %v499_v1 = vadd.f32 %v498_v61, %v497_v59 }
  0xd8   :  { %v493_v3 = vrot.slane %v492_v43, 1  ;;  %v506_v4 = vadd.f32 %v505_v42, %v504_v60 }
  0xd9   :  { %v487_v5 = vadd.f32 %v486_v0, %v485_v51  ;;  %v500_v10 = vrot.slane %v499_v1, 1 }
  0xda   :  { %v494_v44 = vadd.f32 %v493_v3, %v492_v43  ;;  %v507_v45 = vrot.slane %v506_v4, 1 }
  0xdb   :  { %v501_v62 = vadd.f32 %v500_v10, %v499_v1  ;;  %1055 = vrcp.f32 %v487_v5 }
  0xdc   :  { %v508_v63 = vadd.f32 %v507_v45, %v506_v4  ;;  %1057 = vrcp.f32 %v494_v44 }
  0xdd   :  { %1059 = vrcp.f32 %v501_v62 }
  0xde   :  { %1061 = vrcp.f32 %v508_v63 }
  0xe8   :  { %v1056_v17 = vpop.eup %1055 }
  0xe9   :  { %v1058_v18 = vpop.eup %1057  ;;  %v513_v19 = vmul.f32 %v1056_v17, %v1048_v41 }
  0xea   :  { %v1060_v37 = vpop.eup %1059  ;;  %v514_v21 = vmul.f32 %v1058_v18, %v1050_v50 }
  0xeb   :  { %v1062_v32 = vpop.eup %1061  ;;  %v515_v33 = vmul.f32 %v1060_v37, %v1052_v53  ;;  %v544_v34 = vrot.slane %v513_v19, %v1191_v23  ;;  %v1350_v35 = vrot.slane %v513_v19, %v1203_v27  ;;  %v715_v53 = vpop.permute.xlu1 %714 }
  0xec   :  { %v516_v36 = vmul.f32 %v1062_v32, %v1054_v55  ;;  %v548_v38 = vrot.slane %v514_v21, %v1191_v23  ;;  %v984_v39 = vcombine.low %v513_v19, %v514_v21  ;;  %v1354_v40 = vrot.slane %v514_v21, %v1203_v27 }
  0xed   :  { %v552_v41 = vrot.slane %v515_v33, %v1191_v23  ;;  %v557_v22 = vmul.f32 %v544_v34, %v534_v47  ;;  %v1358_v50 = vrot.slane %v515_v33, %v1203_v27  ;;  %v597_v52 = vmul.f32 %v1350_v35, %v575_v31 }
  0xee   :  { %v556_v6 = vrot.slane %v516_v36, %v1191_v23  ;;  %v558_v54 = vmul.f32 %v548_v38, %v534_v47  ;;  %v985_v7 = vcombine.low %v515_v33, %v516_v36  ;;  %v992_v55 = vrot.slane %v984_v39, %v1346_v20 }
  0xef   :  { %v559_v56 = vmul.f32 %v552_v41, %v534_v47  ;;  %v565_v46 = vadd.f32 %v557_v22, %v524_v2  ;;  %v1364_v8 = vrot.slane %v516_v36, %v1203_v27  ;;  %v598_v57 = vmul.f32 %v1354_v40, %v575_v31  ;;  %v529_v44 = vpop.permute.xlu1 %528 }
  0xf0   :  { %v560_v9 = vmul.f32 %v556_v6, %v534_v47  ;;  %v999_v58 = vrot.slane %v985_v7, %v1346_v20  ;;  %v566_v48 = vadd.f32 %v558_v54, %v524_v2  ;;  %v599_v59 = vmul.f32 %v1358_v50, %v575_v31 }
  0xf1   :  { %v567_v60 = vadd.f32 %v559_v56, %v524_v2  ;;  %v600_v61 = vmul.f32 %v1364_v8, %v575_v31  ;;  %v605_v51 = vadd.f32 %v597_v52, %v565_v46  ;;  %v561_v42 = vmul.f32 %v544_v34, %v539_v49 }
  0xf2   :  { %v1000_v43 = vcombine.low %v992_v55, %v999_v58  ;;  %v568_v0 = vadd.f32 %v560_v9, %v524_v2  ;;  %v606_v1 = vadd.f32 %v598_v57, %v566_v48  ;;  %v562_v3 = vmul.f32 %v548_v38, %v539_v49  ;;  %v659_v55 = vpop.permute.xlu0 %658 }
  0xf3   :  { %v607_v4 = vadd.f32 %v599_v59, %v567_v60  ;;  %v1370_v5 = vmax.f32 %v605_v51, 0.0  ;;  %v563_v10 = vmul.f32 %v552_v41, %v539_v49  ;;  %v564_v47 = vmul.f32 %v556_v6, %v539_v49  ;;  %v743_v60 = vpop.permute.xlu1 %742 }
  0xf4   :  { %1002 = vst [vmem:[%s1499_s10] sm:$0xff] %v1000_v43  ;;  %v608_v45 = vadd.f32 %v600_v61, %v568_v0  ;;  %v1375_v62 = vmax.f32 %v606_v1, 0.0  ;;  %v1377_v63 = vadd.f32 %v561_v42, %v529_v44  ;;  %v1379_v12 = vadd.f32 %v562_v3, %v529_v44 }
  0xf5   :  { %v1381_v2 = vmax.f32 %v607_v4, 0.0  ;;  %v720_v13 = vrot.slane %v1370_v5, %v1206_v28  ;;  %v1385_v15 = vadd.f32 %v563_v10, %v529_v44  ;;  %v1387_v17 = vadd.f32 %v564_v47, %v529_v44 }
  0xf6   :  { %v1389_v18 = vmax.f32 %v608_v45, 0.0  ;;  %v724_v19 = vrot.slane %v1375_v62, %v1206_v28  ;;  %v636_v37 = vrot.slane %v1370_v5, %v1191_v23  ;;  %v640_v21 = vrot.slane %v1375_v62, %v1191_v23 }
  0xf7   :  { %v728_v31 = vrot.slane %v1381_v2, %v1206_v28  ;;  %v733_v32 = vmul.f32 %v720_v13, %v715_v53  ;;  %v644_v33 = vrot.slane %v1381_v2, %v1191_v23  ;;  %v664_v34 = vrot.slane %v1370_v5, %v1203_v27 }
  0xf8   :  { %v732_v36 = vrot.slane %v1389_v18, %v1206_v28  ;;  %v734_v38 = vmul.f32 %v724_v19, %v715_v53  ;;  %v648_v39 = vrot.slane %v1389_v18, %v1191_v23  ;;  %v649_v41 = vmul.f32 %v636_v37, %v1339_v11 }
  0xf9   :  { %v735_v22 = vmul.f32 %v728_v31, %v715_v53  ;;  %v650_v52 = vmul.f32 %v640_v21, %v1339_v11  ;;  %v651_v6 = vmul.f32 %v644_v33, %v1339_v11  ;;  %v668_v54 = vrot.slane %v1375_v62, %v1203_v27 }
  0xfa   :  { %v736_v7 = vmul.f32 %v732_v36, %v715_v53  ;;  %v652_v56 = vmul.f32 %v648_v39, %v1339_v11  ;;  %v653_v28 = vadd.f32 %v649_v41, %v1341_v14  ;;  %v672_v46 = vrot.slane %v1381_v2, %v1203_v27 }
  0xfb   :  { %v654_v57 = vadd.f32 %v650_v52, %v1341_v14  ;;  %v655_v9 = vadd.f32 %v651_v6, %v1341_v14  ;;  %v676_v58 = vrot.slane %v1389_v18, %v1203_v27  ;;  %v677_v48 = vmul.f32 %v664_v34, %v659_v55  ;;  %v771_v52 = vpop.permute.xlu1 %770 }
  0xfc   :  { %v656_v59 = vadd.f32 %v652_v56, %v1341_v14  ;;  %v678_v49 = vmul.f32 %v668_v54, %v659_v55  ;;  %v679_v53 = vmul.f32 %v672_v46, %v659_v55  ;;  %v692_v11 = vrot.slane %v1370_v5, %v1194_v24 }
  0xfd   :  { %v680_v61 = vmul.f32 %v676_v58, %v659_v55  ;;  %v681_v51 = vadd.f32 %v677_v48, %v653_v28  ;;  %v696_v42 = vrot.slane %v1375_v62, %v1194_v24  ;;  %v700_v43 = vrot.slane %v1381_v2, %v1194_v24 }
  0xfe   :  { %v682_v0 = vadd.f32 %v678_v49, %v654_v57  ;;  %v683_v1 = vadd.f32 %v679_v53, %v655_v9  ;;  %v704_v27 = vrot.slane %v1389_v18, %v1194_v24  ;;  %v705_v14 = vmul.f32 %v692_v11, %v1343_v16  ;;  %v579_v24 = vpop.permute.xlu0 %578 }
  0xff   :  { %v684_v3 = vadd.f32 %v680_v61, %v656_v59  ;;  %v706_v4 = vmul.f32 %v696_v42, %v1343_v16  ;;  %v707_v10 = vmul.f32 %v700_v43, %v1343_v16  ;;  %v748_v47 = vrot.slane %v1370_v5, %v1197_v25 }
 0x100   :  { %v708_v44 = vmul.f32 %v704_v27, %v1343_v16  ;;  %v709_v45 = vadd.f32 %v705_v14, %v681_v51  ;;  %v752_v13 = vrot.slane %v1375_v62, %v1197_v25  ;;  %v756_v19 = vrot.slane %v1381_v2, %v1197_v25 }
 0x101   :  { %v710_v37 = vadd.f32 %v706_v4, %v682_v0  ;;  %v711_v21 = vadd.f32 %v707_v10, %v683_v1  ;;  %v760_v31 = vrot.slane %v1389_v18, %v1197_v25  ;;  %v761_v33 = vmul.f32 %v748_v47, %v743_v60 }
 0x102   :  { %v712_v34 = vadd.f32 %v708_v44, %v684_v3  ;;  %v737_v36 = vadd.f32 %v733_v32, %v709_v45  ;;  %v762_v39 = vmul.f32 %v752_v13, %v743_v60  ;;  %v763_v41 = vmul.f32 %v756_v19, %v743_v60  ;;  %v799_v0 = vpop.permute.xlu0 %798 }
 0x103   :  { %v738_v16 = vadd.f32 %v734_v38, %v710_v37  ;;  %v739_v6 = vadd.f32 %v735_v22, %v711_v21  ;;  %v764_v54 = vmul.f32 %v760_v31, %v743_v60  ;;  %v601_v55 = vmul.f32 %v1350_v35, %v579_v24 }
 0x104   :  { %v740_v56 = vadd.f32 %v736_v7, %v712_v34  ;;  %v765_v28 = vadd.f32 %v761_v33, %v737_v36  ;;  %v602_v46 = vmul.f32 %v1354_v40, %v579_v24  ;;  %v603_v57 = vmul.f32 %v1358_v50, %v579_v24  ;;  %v827_v7 = vpop.permute.xlu1 %826 }
 0x105   :  { %v766_v9 = vadd.f32 %v762_v39, %v738_v16  ;;  %v767_v58 = vadd.f32 %v763_v41, %v739_v6  ;;  %v604_v25 = vmul.f32 %v1364_v8, %v579_v24  ;;  %v609_v32 = vadd.f32 %v601_v55, %v1377_v63 }
 0x106   :  { %v768_v48 = vadd.f32 %v764_v54, %v740_v56  ;;  %v610_v59 = vadd.f32 %v602_v46, %v1379_v12  ;;  %v611_v38 = vadd.f32 %v603_v57, %v1385_v15  ;;  %v776_v35 = vrot.slane %v1370_v5, %v1209_v29 }
 0x107   :  { %v612_v22 = vadd.f32 %v604_v25, %v1387_v17  ;;  %v780_v40 = vrot.slane %v1375_v62, %v1209_v29  ;;  %v784_v50 = vrot.slane %v1381_v2, %v1209_v29  ;;  %v788_v8 = vrot.slane %v1389_v18, %v1209_v29 }
 0x108   :  { %v789_v63 = vmul.f32 %v776_v35, %v771_v52  ;;  %v832_v12 = vrot.slane %v1370_v5, %v1212_v30  ;;  %v836_v15 = vrot.slane %v1375_v62, %v1212_v30  ;;  %v840_v17 = vrot.slane %v1381_v2, %v1212_v30  ;;  %v855_v31 = vpop.permute.xlu1 %854 }
 0x109   :  { %v790_v49 = vmul.f32 %v780_v40, %v771_v52  ;;  %v791_v53 = vmul.f32 %v784_v50, %v771_v52  ;;  %v792_v11 = vmul.f32 %v788_v8, %v771_v52  ;;  %v844_v60 = vrot.slane %v1389_v18, %v1212_v30 }
 0x10a   :  { %v845_v61 = vmul.f32 %v832_v12, %v827_v7  ;;  %v846_v51 = vmul.f32 %v836_v15, %v827_v7  ;;  %v847_v29 = vmul.f32 %v840_v17, %v827_v7  ;;  %v793_v42 = vadd.f32 %v789_v63, %v765_v28 }
 0x10b   :  { %v848_v43 = vmul.f32 %v844_v60, %v827_v7  ;;  %v794_v1 = vadd.f32 %v790_v49, %v766_v9  ;;  %v795_v27 = vadd.f32 %v791_v53, %v767_v58  ;;  %v796_v14 = vadd.f32 %v792_v11, %v768_v48 }
 0x10c   :  { %v804_v3 = vrot.slane %v1370_v5, %v1200_v26  ;;  %v808_v4 = vrot.slane %v1375_v62, %v1200_v26  ;;  %v812_v10 = vrot.slane %v1381_v2, %v1200_v26  ;;  %v816_v30 = vrot.slane %v1389_v18, %v1200_v26 }
 0x10d   :  { %v617_v47 = vmax.f32 %v609_v32, 0.0  ;;  %v618_v44 = vmax.f32 %v610_v59, 0.0  ;;  %v619_v45 = vmax.f32 %v611_v38, 0.0  ;;  %v620_v13 = vmax.f32 %v612_v22, 0.0 }
 0x10e   :  { %v817_v19 = vmul.f32 %v804_v3, %v799_v0  ;;  %v818_v24 = vmul.f32 %v808_v4, %v799_v0  ;;  %v819_v37 = vmul.f32 %v812_v10, %v799_v0  ;;  %v820_v21 = vmul.f32 %v816_v30, %v799_v0 }
 0x10f   :  { %v860_v5 = vrot.slane %v617_v47, %v1191_v23  ;;  %v864_v33 = vrot.slane %v618_v44, %v1191_v23  ;;  %v868_v62 = vrot.slane %v619_v45, %v1191_v23  ;;  %v872_v2 = vrot.slane %v620_v13, %v1191_v23 }
 0x110   :  { %v821_v34 = vadd.f32 %v817_v19, %v793_v42  ;;  %v822_v36 = vadd.f32 %v818_v24, %v794_v1  ;;  %v823_v26 = vadd.f32 %v819_v37, %v795_v27  ;;  %v824_v18 = vadd.f32 %v820_v21, %v796_v14 }
 0x111   :  { %v873_v39 = vmul.f32 %v860_v5, %v855_v31  ;;  %v874_v41 = vmul.f32 %v864_v33, %v855_v31  ;;  %v875_v52 = vmul.f32 %v868_v62, %v855_v31  ;;  %v876_v16 = vmul.f32 %v872_v2, %v855_v31 }
 0x112   :  { %v849_v6 = vadd.f32 %v845_v61, %v821_v34  ;;  %v850_v54 = vadd.f32 %v846_v51, %v822_v36  ;;  %v851_v55 = vadd.f32 %v847_v29, %v823_v26  ;;  %v852_v56 = vadd.f32 %v848_v43, %v824_v18 }
 0x114   :  { %v877_v28 = vadd.f32 %v873_v39, %v849_v6  ;;  %v878_v46 = vadd.f32 %v874_v41, %v850_v54  ;;  %v879_v57 = vadd.f32 %v875_v52, %v851_v55  ;;  %v880_v9 = vadd.f32 %v876_v16, %v852_v56 }
 0x116   :  { %v881_v58 = vsel %vm440_vm0, %v877_v28, -inf  ;;  %v888_v23 = vsel %vm440_vm0, %v878_v46, -inf  ;;  %v895_v25 = vsel %vm440_vm0, %v879_v57, -inf  ;;  %v902_v32 = vsel %vm440_vm0, %v880_v9, -inf }
 0x117   :  { %v882_v48 = vrot.slane %v881_v58, 4  ;;  %v889_v59 = vrot.slane %v888_v23, 4  ;;  %v896_v38 = vrot.slane %v895_v25, 4  ;;  %v903_v35 = vrot.slane %v902_v32, 4 }
 0x119   :  { %v883_v22 = vmax.f32 %v881_v58, %v882_v48  ;;  %v890_v40 = vmax.f32 %v888_v23, %v889_v59  ;;  %v897_v50 = vmax.f32 %v895_v25, %v896_v38  ;;  %v904_v8 = vmax.f32 %v902_v32, %v903_v35 }
 0x11b   :  { %v884_v63 = vrot.slane %v883_v22, 2  ;;  %v891_v7 = vrot.slane %v890_v40, 2  ;;  %v898_v12 = vrot.slane %v897_v50, 2  ;;  %v905_v15 = vrot.slane %v904_v8, 2 }
 0x11d   :  { %v885_v17 = vmax.f32 %v883_v22, %v884_v63  ;;  %v892_v49 = vmax.f32 %v890_v40, %v891_v7  ;;  %v899_v53 = vmax.f32 %v897_v50, %v898_v12  ;;  %v906_v11 = vmax.f32 %v904_v8, %v905_v15 }
 0x11f   :  { %v886_v60 = vrot.slane %v885_v17, 1  ;;  %v893_v61 = vrot.slane %v892_v49, 1  ;;  %v900_v51 = vrot.slane %v899_v53, 1  ;;  %v907_v29 = vrot.slane %v906_v11, 1 }
 0x121   :  { %v887_v42 = vmax.f32 %v885_v17, %v886_v60  ;;  %v894_v43 = vmax.f32 %v892_v49, %v893_v61  ;;  %v901_v0 = vmax.f32 %v899_v53, %v900_v51  ;;  %v908_v1 = vmax.f32 %v906_v11, %v907_v29 }
 0x123   :  { %v909_v27 = vsub.f32 %v877_v28, %v887_v42  ;;  %v910_v14 = vsub.f32 %v878_v46, %v894_v43  ;;  %v911_v3 = vsub.f32 %v879_v57, %v901_v0  ;;  %v912_v4 = vsub.f32 %v880_v9, %v908_v1 }
 0x125   :  { %v913_v10 = vmul.f32 1.442695, %v909_v27  ;;  %v915_v30 = vmul.f32 1.442695, %v910_v14  ;;  %v917_v47 = vmul.f32 1.442695, %v911_v3 }
 0x126   :  { %v919_v44 = vmul.f32 1.442695, %v912_v4 }
 0x127   :  { %1063 = vpow2.f32 %v913_v10 }
 0x128   :  { %1065 = vpow2.f32 %v915_v30 }
 0x129   :  { %1067 = vpow2.f32 %v917_v47 }
 0x12a   :  { %1069 = vpow2.f32 %v919_v44 }
 0x134   :  { %v1064_v45 = vpop.eup %1063 }
 0x135   :  { %v1066_v13 = vpop.eup %1065  ;;  %v921_v19 = vsel %vm440_vm0, %v1064_v45, 0.0 }
 0x136   :  { %v1068_v24 = vpop.eup %1067  ;;  %v922_v37 = vrot.slane %v921_v19, 4  ;;  %v928_v21 = vsel %vm440_vm0, %v1066_v13, 0.0 }
 0x137   :  { %v1070_v31 = vpop.eup %1069  ;;  %v929_v5 = vrot.slane %v928_v21, 4  ;;  %v935_v33 = vsel %vm440_vm0, %v1068_v24, 0.0 }
 0x138   :  { %v923_v62 = vadd.f32 %v922_v37, %v921_v19  ;;  %v936_v2 = vrot.slane %v935_v33, 4  ;;  %v942_v34 = vsel %vm440_vm0, %v1070_v31, 0.0 }
 0x139   :  { %v930_v36 = vadd.f32 %v929_v5, %v928_v21  ;;  %v943_v26 = vrot.slane %v942_v34, 4 }
 0x13a   :  { %v924_v18 = vrot.slane %v923_v62, 2  ;;  %v937_v39 = vadd.f32 %v936_v2, %v935_v33 }
 0x13b   :  { %v931_v41 = vrot.slane %v930_v36, 2  ;;  %v944_v52 = vadd.f32 %v943_v26, %v942_v34 }
 0x13c   :  { %v925_v16 = vadd.f32 %v924_v18, %v923_v62  ;;  %v938_v6 = vrot.slane %v937_v39, 2 }
 0x13d   :  { %v932_v54 = vadd.f32 %v931_v41, %v930_v36  ;;  %v945_v55 = vrot.slane %v944_v52, 2 }
 0x13e   :  { %v926_v56 = vrot.slane %v925_v16, 1  ;;  %v939_v28 = vadd.f32 %v938_v6, %v937_v39 }
 0x13f   :  { %v933_v46 = vrot.slane %v932_v54, 1  ;;  %v946_v57 = vadd.f32 %v945_v55, %v944_v52 }
 0x140   :  { %v927_v9 = vadd.f32 %v926_v56, %v925_v16  ;;  %v940_v58 = vrot.slane %v939_v28, 1 }
 0x141   :  { %v934_v23 = vadd.f32 %v933_v46, %v932_v54  ;;  %v947_v25 = vrot.slane %v946_v57, 1 }
 0x142   :  { %v941_v32 = vadd.f32 %v940_v58, %v939_v28  ;;  %1071 = vrcp.f32 %v927_v9 }
 0x143   :  { %v948_v48 = vadd.f32 %v947_v25, %v946_v57  ;;  %1073 = vrcp.f32 %v934_v23 }
 0x144   :  { %1075 = vrcp.f32 %v941_v32 }
 0x145   :  { %1077 = vrcp.f32 %v948_v48 }
 0x14f   :  { %v1072_v59 = vpop.eup %1071 }
 0x150   :  { %v1074_v38 = vpop.eup %1073  ;;  %v953_v35 = vmul.f32 %v1072_v59, %v1064_v45 }
 0x151   :  { %v1076_v22 = vpop.eup %1075  ;;  %v954_v40 = vmul.f32 %v1074_v38, %v1066_v13 }
 0x152   :  { %v1078_v50 = vpop.eup %1077  ;;  %v955_v8 = vmul.f32 %v1076_v22, %v1068_v24 }
 0x153   :  { %v956_v63 = vmul.f32 %v1078_v50, %v1070_v31  ;;  %v961_v7 = vcombine.low %v953_v35, %v954_v40 }
 0x155   :  { %v962_v12 = vcombine.low %v955_v8, %v956_v63  ;;  %v969_v15 = vrot.slane %v961_v7, %v1346_v20 }
 0x157   :  { %v976_v17 = vrot.slane %v962_v12, %v1346_v20 }
 0x159   :  { %v977_v49 = vcombine.low %v969_v15, %v976_v17 }
 0x15b   :  { %979 = vst [vmem:[%s1500_s9] sm:$0xff] %v977_v49 }

</bundles_post_ra>
